<compile_context>
chip_gen: v7x
topology: tpu7x:2x2x1
jax: 0.10.0
libtpu: 0.0.40
codegen_flags: <defaults>
</compile_context>

<pallas_src>
import jax
import jax.numpy as jnp
from jax.experimental import pallas as pl
from jax.experimental.pallas import tpu as pltpu

IN_DIM = 3
HIDDEN = 32
SCALE = float(HIDDEN) ** 0.5  # np.sqrt(32); only used by the faithful reference

# Row layout of the fused parameter slab (40 rows x 64 lanes, f32):
#   rows 0..2 , cols 0..31 : W_w  (3 x 32), already transposed to (in, out)
#   row  3    , cols 0..31 : b_w
#   row  4    , cols 0..63 : [b_k | b_q]
#   rows 8..39, cols 0..63 : [W_k | W_q]  (32 x 64)
ROW_BW = 3
ROW_BKQ = 4
ROW_WKQ = 8
SLAB_ROWS = 40


def model_kernel(xs_ref, w_ref, o_ref):
    xs = xs_ref[...]                                    # (3, 3)  rows = x1,x2,x3
    ww = w_ref[0:IN_DIM, 0:HIDDEN]                      # (3, 32)
    bw = w_ref[ROW_BW:ROW_BW + 1, 0:HIDDEN]             # (1, 32)
    bkq = w_ref[ROW_BKQ:ROW_BKQ + 1, :]                 # (1, 64)
    wkq = w_ref[ROW_WKQ:SLAB_ROWS, :]                   # (32, 64)

    # y_i = self.w(x_i)  -- one MXU pass for all three tokens.
    y = jnp.dot(xs, ww, preferred_element_type=jnp.float32) + bw        # (3, 32)
    # [k(y_i) | q(y_i)]  -- one MXU pass for both projections.
    kq = jnp.dot(y, wkq, preferred_element_type=jnp.float32) + bkq      # (3, 64)

    y4 = kq[0:1, 0:HIDDEN]
    y5 = kq[1:2, 0:HIDDEN]
    y6 = kq[2:3, 0:HIDDEN]

    # Attention scores y10..y12 are (1,1); softmax over a size-1 axis is
    # exactly 1.0 and Dropout is eval-mode identity, so the weighted sum
    # reduces exactly to y4 + y5 + y6.  (The q half of `kq` rides along in
    # the fused matmul but is not needed downstream.)
    o_ref[0:1, :] = y4 + y5 + y6
    o_ref[1:2, :] = y4
    o_ref[2:3, :] = y5
    o_ref[3:4, :] = y6


@jax.jit
def model_forward(x1, x2, x3, params):
    ww, bw, wk, bk, wq, bq = params
    f32 = jnp.float32

    # ---- host-side packing (fused into the jit; negligible) ----------------
    xs = jnp.concatenate([x1, x2, x3], axis=0)                    # (3, 3)

    wslab = jnp.zeros((SLAB_ROWS, 2 * HIDDEN), f32)
    wslab = wslab.at[0:IN_DIM, 0:HIDDEN].set(ww)
    wslab = wslab.at[ROW_BW, 0:HIDDEN].set(bw[0])
    wslab = wslab.at[ROW_BKQ, 0:HIDDEN].set(bk[0])
    wslab = wslab.at[ROW_BKQ, HIDDEN:2 * HIDDEN].set(bq[0])
    wslab = wslab.at[ROW_WKQ:SLAB_ROWS, 0:HIDDEN].set(wk)
    wslab = wslab.at[ROW_WKQ:SLAB_ROWS, HIDDEN:2 * HIDDEN].set(wq)

    vmem = pl.BlockSpec(memory_space=pltpu.MemorySpace.VMEM)
    slab = pl.pallas_call(
        model_kernel,
        out_shape=jax.ShapeDtypeStruct((4, HIDDEN), f32),
        in_specs=[vmem, vmem],
        out_specs=vmem,
        cost_estimate=pl.CostEstimate(
            flops=2 * IN_DIM * IN_DIM * HIDDEN + 2 * IN_DIM * HIDDEN * 2 * HIDDEN,
            transcendentals=0,
            bytes_accessed=4 * (IN_DIM * IN_DIM + SLAB_ROWS * 2 * HIDDEN + 4 * HIDDEN),
        ),
    )(xs, wslab)

    out = slab[0:1, :]
    y4 = slab[1:2, :]
    y5 = slab[2:3, :]
    y6 = slab[3:4, :]
    # softmax over a size-1 last axis == 1.0 exactly; Dropout eval mode == identity.
    one = jnp.ones((1, 1), f32)
    return out, one, y4, one, y5, one, y6


def init_params(key):
    """Deterministic parameter init; shapes follow nn.Linear(3,32), (32,32), (32,32)."""
    k1, k2, k3, k4, k5, k6 = jax.random.split(key, 6)
    # PyTorch stores weight as (out, in); we keep the (in, out) layout so y = x @ W + b.
    ww = jax.random.normal(k1, (IN_DIM, HIDDEN), jnp.float32) * 0.1
    bw = jax.random.normal(k2, (1, HIDDEN), jnp.float32) * 0.1
    wk = jax.random.normal(k3, (HIDDEN, HIDDEN), jnp.float32) * 0.1
    bk = jax.random.normal(k4, (1, HIDDEN), jnp.float32) * 0.1
    wq = jax.random.normal(k5, (HIDDEN, HIDDEN), jnp.float32) * 0.1
    bq = jax.random.normal(k6, (1, HIDDEN), jnp.float32) * 0.1
    return ww, bw, wk, bk, wq, bq


def reference_forward(x1, x2, x3, params):
    """Faithful (unoptimized) re-implementation of the PyTorch forward."""
    ww, bw, wk, bk, wq, bq = params
    lin = lambda x, w, b: x @ w + b
    y1, y2, y3 = lin(x1, ww, bw), lin(x2, ww, bw), lin(x3, ww, bw)
    y4, y5, y6 = lin(y1, wk, bk), lin(y2, wk, bk), lin(y3, wk, bk)
    y7, y8, y9 = lin(y1, wq, bq), lin(y2, wq, bq), lin(y3, wq, bq)
    y10 = y7 @ y5.T
    y11 = y8 @ y6.T
    y12 = y9 @ y4.T
    z1 = jax.nn.softmax(y10 * SCALE, axis=-1)
    z2 = jax.nn.softmax(y11 * SCALE, axis=-1)
    z3 = jax.nn.softmax(y12 * SCALE, axis=-1)
    return (z1 @ y4 + z2 @ y5 + z3 @ y6, z1, y4, z2, y5, z3, y6)


if __name__ == "__main__":
    key = jax.random.PRNGKey(0)
    kp, kx1, kx2, kx3 = jax.random.split(key, 4)
    params = init_params(kp)
    x1 = jax.random.normal(kx1, (1, IN_DIM), jnp.float32)
    x2 = jax.random.normal(kx2, (1, IN_DIM), jnp.float32)
    x3 = jax.random.normal(kx3, (1, IN_DIM), jnp.float32)

    outs = model_forward(x1, x2, x3, params)
    outs = jax.block_until_ready(outs)

    refs = reference_forward(x1, x2, x3, params)
    for o, r in zip(outs, refs):
        assert o.shape == r.shape, (o.shape, r.shape)
        assert jnp.allclose(o, r, atol=1e-4, rtol=1e-4), (o, r)

    print("KERNEL_OK")
</pallas_src>

<mosaic_0001>
module attributes {stable_mosaic.version = 11 : i64} {
  func.func @model_kernel(%arg0: memref<3x3xf32, #tpu.memory_space<vmem>>, %arg1: memref<40x64xf32, #tpu.memory_space<vmem>>, %arg2: memref<4x32xf32, #tpu.memory_space<vmem>>) attributes {dimension_semantics = [], scalar_prefetch = 0 : i64, scratch_operands = 0 : i64, tpu.core_type = #tpu.core_type<tc>} {
    %c0 = arith.constant 0 : index
    %c0_0 = arith.constant 0 : index
    %0 = vector.load %arg0[%c0, %c0_0] : memref<3x3xf32, #tpu.memory_space<vmem>>, vector<3x3xf32>
    %c0_1 = arith.constant 0 : index
    %c0_2 = arith.constant 0 : index
    %1 = vector.load %arg1[%c0_1, %c0_2] : memref<40x64xf32, #tpu.memory_space<vmem>>, vector<3x32xf32>
    %c3 = arith.constant 3 : index
    %c0_3 = arith.constant 0 : index
    %2 = vector.load %arg1[%c3, %c0_3] : memref<40x64xf32, #tpu.memory_space<vmem>>, vector<1x32xf32>
    %c4 = arith.constant 4 : index
    %c0_4 = arith.constant 0 : index
    %3 = vector.load %arg1[%c4, %c0_4] : memref<40x64xf32, #tpu.memory_space<vmem>>, vector<1x64xf32>
    %c8 = arith.constant 8 : index
    %c0_5 = arith.constant 0 : index
    %4 = vector.load %arg1[%c8, %c0_5] : memref<40x64xf32, #tpu.memory_space<vmem>>, vector<32x64xf32>
    %cst = arith.constant dense<0.000000e+00> : vector<3x32xf32>
    %5 = tpu.matmul %0, %1, %cst {dimension_numbers = #tpu.dot_dimension_numbers<[1], [0], [0], [1], [0, 0, 1, 1], [], []>} : vector<3x3xf32>, vector<3x32xf32>, vector<3x32xf32> -> vector<3x32xf32>
    %6 = vector.broadcast %2 : vector<1x32xf32> to vector<3x32xf32>
    %7 = arith.addf %5, %6 : vector<3x32xf32>
    %cst_6 = arith.constant dense<0.000000e+00> : vector<3x64xf32>
    %8 = tpu.matmul %7, %4, %cst_6 {dimension_numbers = #tpu.dot_dimension_numbers<[1], [0], [0], [1], [0, 0, 1, 1], [], []>} : vector<3x32xf32>, vector<32x64xf32>, vector<3x64xf32> -> vector<3x64xf32>
    %9 = vector.broadcast %3 : vector<1x64xf32> to vector<3x64xf32>
    %10 = arith.addf %8, %9 : vector<3x64xf32>
    %11 = vector.extract_strided_slice %10 {offsets = [0, 0], sizes = [1, 32], strides = [1, 1]} : vector<3x64xf32> to vector<1x32xf32>
    %12 = vector.extract_strided_slice %10 {offsets = [1, 0], sizes = [1, 32], strides = [1, 1]} : vector<3x64xf32> to vector<1x32xf32>
    %13 = vector.extract_strided_slice %10 {offsets = [2, 0], sizes = [1, 32], strides = [1, 1]} : vector<3x64xf32> to vector<1x32xf32>
    %14 = arith.addf %11, %12 : vector<1x32xf32>
    %15 = arith.addf %14, %13 : vector<1x32xf32>
    %c0_7 = arith.constant 0 : index
    %c0_8 = arith.constant 0 : index
    %16 = vector.load %arg2[%c0_7, %c0_8] : memref<4x32xf32, #tpu.memory_space<vmem>>, vector<1x32xf32>
    tpu.vector_store %arg2[%c0_7, %c0_8], %15 {strides = array<i32>} : memref<4x32xf32, #tpu.memory_space<vmem>>, vector<1x32xf32>,
    %c1 = arith.constant 1 : index
    %c0_9 = arith.constant 0 : index
    %17 = vector.load %arg2[%c1, %c0_9] : memref<4x32xf32, #tpu.memory_space<vmem>>, vector<1x32xf32>
    tpu.vector_store %arg2[%c1, %c0_9], %11 {strides = array<i32>} : memref<4x32xf32, #tpu.memory_space<vmem>>, vector<1x32xf32>,
    %c2 = arith.constant 2 : index
    %c0_10 = arith.constant 0 : index
    %18 = vector.load %arg2[%c2, %c0_10] : memref<4x32xf32, #tpu.memory_space<vmem>>, vector<1x32xf32>
    tpu.vector_store %arg2[%c2, %c0_10], %12 {strides = array<i32>} : memref<4x32xf32, #tpu.memory_space<vmem>>, vector<1x32xf32>,
    %c3_11 = arith.constant 3 : index
    %c0_12 = arith.constant 0 : index
    %19 = vector.load %arg2[%c3_11, %c0_12] : memref<4x32xf32, #tpu.memory_space<vmem>>, vector<1x32xf32>
    tpu.vector_store %arg2[%c3_11, %c0_12], %13 {strides = array<i32>} : memref<4x32xf32, #tpu.memory_space<vmem>>, vector<1x32xf32>,
    return
  }
}

</mosaic_0001>

<bundles_post_ra>
// kernel: model_forward.1
= control target key start
LH: loop header
LB: loop body
LE: loop exit
PB: predicated region body
PF: predicated region fallthrough
CT: control target
= control target key end

     0   :  { %vm27_vm0 = vcmask 1042432   ;;  %vm23_vm1 = vcmask 23552   ;;  %v234_v0 = vmov 0.0   ;;  %vm235_vm2 = vmmov 0   ;;  %s288_s1 = inlined_call_operand.vmem [shape: f32[40,64], index: 1, kind: input, shape index: {}]   ;;  %s289_s0 = inlined_call_operand.vmem [shape: f32[3,3], index: 0, kind: input, shape index: {}]   ;;  %s290_s2 = inlined_call_operand.vmem [shape: f32[4,32], index: 2, kind: output, shape index: {}]  }
   0x1   :  { %209 = vmatprep.subr.mxu0 %v234_v0  ;;  %v12_v1 = vld [vmem:[%s288_s1] sm:$0x7]  ;;  %211 = vmatprep.mubr.msk.f32.mxu0 %vm235_vm2, %v234_v0  ;;  %v15_v3 = vld [vmem:[%s288_s1 + $0x8] sm:$0xff]  ;;  %v236_v4 = vmov 0.0|0.0   ;;  %v16_v5 = vld [vmem:[%s288_s1 + $0x10] sm:$0xff]  ;;  %vm105_vm3 = vcmask 261120  }
   0x2   :  { %v11_v2 = vld [vmem:[%s289_s0] sm:$0x7]  ;;  %210 = vmatpush3.msk.msra.mxu0 %vm27_vm0, %v12_v1  ;;  %225 = vmatprep.subr.bf16.mxu1 %v236_v4  ;;  %v226_v6 = vpack.c.bf16 %v16_v5, %v15_v3  ;;  %v17_v7 = vld [vmem:[%s288_s1 + $0x18] sm:$0xff]  ;;  %v197_v10 = vld [vmem:[%s288_s1 + $0x3] ss:$0 sm:$0xff]  ;;  %vm186_vm4 = vcmask 253952  }
   0x3   :  { %212 = vmatmul.mubr.msk.f32.vlgmr.msra.gmra.mrb[0].mxu0 %vm23_vm1, %v11_v2  ;;  %222 = vmatprep.mubr.msk.f32.mxu1 %vm235_vm2, %v234_v0  ;;  %v18_v8 = vld [vmem:[%s288_s1 + $0x20] sm:$0xff]  ;;  %vm189_vm5 = vcmask 254977   ;;  %vm191_vm6 = vcmask 256002  }
   0x4   :  { %227 = vmatpush3.bf16.msra.mxu1 %v226_v6  ;;  %v229_v9 = vpack.c.bf16 %v18_v8, %v17_v7  ;;  %v200_v14 = vld [vmem:[%s288_s1 + $0x4] ss:$0 sm:$0xff] }
   0x5   :  { %228 = vmatprep.subr.bf16.mxu1 %v236_v4 }
   0x8   :  { %230 = vmatpush3.bf16.msra.mxu1 %v229_v9 }
  0xd6   :  { %v97_v11 = vpop.f32.mrb[0].mxu0 }
  0xd7   :  { %v98_v12 = vadd.f32 %v197_v10, %v97_v11  ;;  %v213_v13 = vpop.f32.mrb[1].mxu0 }
  0xd9   :  { %223 = vmatmul.mubr.msk.f32.vlgmr.msra.gmra.mrb[0].mxu1 %vm105_vm3, %v98_v12 }
 0x1ac   :  { %v175_v15 = vpop.f32.mrb[0].mxu1 }
 0x1ad   :  { %v176_v16 = vadd.f32 %v200_v14, %v175_v15  ;;  %v224_v17 = vpop.f32.mrb[1].mxu1 }
 0x1af   :  { %v180_v18 = vrot.slane %v176_v16, 1  ;;  %188 = vst.msk [vmem:[%s290_s2 + $0x1] sm:$0x1] %vm186_vm4, %v176_v16  ;;  %v183_v20 = vrot.slane %v176_v16, 2 }
 0x1b0   :  { %190 = vst.msk [vmem:[%s290_s2 + $0x1] sm:$0x2] %vm189_vm5, %v176_v16 }
 0x1b1   :  { %192 = vst.msk [vmem:[%s290_s2 + $0x1] sm:$0x4] %vm191_vm6, %v176_v16  ;;  %v182_v19 = vadd.f32 %v180_v18, %v176_v16 }
 0x1b3   :  { %v185_v21 = vadd.f32 %v183_v20, %v182_v19 }
 0x1b5   :  { %187 = vst.msk [vmem:[%s290_s2] sm:$0x1] %vm186_vm4, %v185_v21 }

</bundles_post_ra>
